<compile_context>
chip_gen: v7x
topology: tpu7x:2x2x1
jax: 0.10.0
libtpu: 0.0.40
codegen_flags: <defaults>
</compile_context>

<pallas_src>
import functools

import jax
import jax.numpy as jnp
from jax.experimental import pallas as pl
from jax.experimental.pallas import tpu as pltpu


def _ceil_div(a, b):
    return -(-a // b)


def local_cnn_kernel(x_ref, pos_ref, w1_ref, b1_ref, w2_ref, b2_ref, out_ref):
    """One grid step = TB sequences flattened to a (TB*L, C) slab.

    conv1 -> relu -> conv2 -> relu -> per-sequence max.
    """
    rows = x_ref.shape[0]                 # TB * L
    tb, c_out = out_ref.shape
    seq_len = rows // tb
    f32 = jnp.float32

    # Per-row position within its sequence (resident input, built in wrapper).
    pos = pos_ref[...]                    # (rows, 1) int32
    not_first = pos != 0                  # left tap valid (padding=1 at t==0)
    not_last = pos != seq_len - 1         # right tap valid (padding=1 at t==L-1)

    x = x_ref[...]                        # (rows, C_in) — channels on lanes

    # ---- conv1 (kernel=3, padding=1) as three accumulated MXU dots.
    # Taps realized by rolling the narrow input along sublanes + masking the
    # sequence / batch-element boundaries.  No scratch, no zero-fill.
    x_prev = jnp.where(not_first, pltpu.roll(x, shift=1, axis=0), 0)
    x_next = jnp.where(not_last, pltpu.roll(x, shift=rows - 1, axis=0), 0)
    h1 = jnp.dot(x, w1_ref[1], preferred_element_type=f32)
    h1 = h1 + jnp.dot(x_prev, w1_ref[0], preferred_element_type=f32)
    h1 = h1 + jnp.dot(x_next, w1_ref[2], preferred_element_type=f32)
    h1 = jnp.maximum(h1 + b1_ref[...], 0.0)          # (rows, C_mid) f32

    # ---- conv2: same trick, but roll the narrow (C_out-lane) partial
    # products instead of the wide (C_mid-lane) h1 operand -> lower vreg
    # pressure, identical total MXU work.
    h1m = h1.astype(w2_ref.dtype)                    # bf16 fast path on v6e/v7x
    p_l = jnp.dot(h1m, w2_ref[0], preferred_element_type=f32)
    p_c = jnp.dot(h1m, w2_ref[1], preferred_element_type=f32)
    p_r = jnp.dot(h1m, w2_ref[2], preferred_element_type=f32)
    h2 = p_c
    h2 = h2 + jnp.where(not_first, pltpu.roll(p_l, shift=1, axis=0), 0.0)
    h2 = h2 + jnp.where(not_last, pltpu.roll(p_r, shift=rows - 1, axis=0), 0.0)
    h2 = jnp.maximum(h2 + b2_ref[...], 0.0)          # (rows, C_out) f32

    # ---- AdaptiveMaxPool1d(1).squeeze(-1): per-sequence max over L.
    out_ref[...] = jnp.max(h2.reshape(tb, seq_len, c_out), axis=1)


def local_cnn_forward(x, w1, b1, w2, b2, *, target_rows=256,
                      mxu_dtype=jnp.float32):
    """x: (B, C_in, L) f32.  w1: (C_mid, C_in, 3), w2: (C_out, C_mid, 3).

    mxu_dtype=jnp.bfloat16 is the fast path on v6e/v7x (f32 accumulation is
    kept via preferred_element_type); f32 default keeps tight tolerances.
    """
    B, C_in, L = x.shape
    C_mid, _, K = w1.shape
    C_out = w2.shape[0]
    assert K == 3 and w2.shape[2] == 3

    # Batch tile: enough sequences per grid step for M = TB*L >= target_rows
    # (MXU fill), rounded to a sublane-friendly multiple of 8 when tiling.
    tb = _ceil_div(target_rows, L)
    tb = _ceil_div(tb, 8) * 8
    if tb >= B:
        tb = B                              # single step: block == full batch
    b_pad = _ceil_div(B, tb) * tb
    grid = b_pad // tb

    # (B, C_in, L) -> (B_pad*L, C_in): channels on lanes, batch*seq on sublanes.
    # No im2col — taps are built in-kernel.
    xt = jnp.transpose(x, (0, 2, 1)).astype(mxu_dtype)          # (B, L, C_in)
    if b_pad != B:
        xt = jnp.concatenate(
            [xt, jnp.zeros((b_pad - B, L, C_in), xt.dtype)], axis=0)
    xt = xt.reshape(b_pad * L, C_in)

    # Per-row position within its sequence (same pattern for every block).
    pos = (jnp.arange(tb * L, dtype=jnp.int32) % L).reshape(tb * L, 1)

    # Tap-major transposed weights: w{1,2}s[k] = W_k^T, shape (C_prev, C_cur).
    w1s = jnp.transpose(w1, (2, 1, 0)).astype(mxu_dtype)        # (3, C_in, C_mid)
    w2s = jnp.transpose(w2, (2, 1, 0)).astype(mxu_dtype)        # (3, C_mid, C_out)
    b1r = b1.reshape(1, C_mid).astype(jnp.float32)
    b2r = b2.reshape(1, C_out).astype(jnp.float32)

    out = pl.pallas_call(
        local_cnn_kernel,
        out_shape=jax.ShapeDtypeStruct((b_pad, C_out), jnp.float32),
        grid_spec=pltpu.PrefetchScalarGridSpec(
            num_scalar_prefetch=0,
            grid=(grid,),                                       # batch-parallel
            in_specs=[
                pl.BlockSpec((tb * L, C_in), lambda b: (b, 0)),     # batch tile
                pl.BlockSpec((tb * L, 1), lambda b: (0, 0)),        # pos (resident)
                pl.BlockSpec((3, C_in, C_mid), lambda b: (0, 0, 0)),  # w1 (resident)
                pl.BlockSpec((1, C_mid), lambda b: (0, 0)),         # b1
                pl.BlockSpec((3, C_mid, C_out), lambda b: (0, 0, 0)),  # w2 (resident)
                pl.BlockSpec((1, C_out), lambda b: (0, 0)),         # b2
            ],
            out_specs=pl.BlockSpec((tb, C_out), lambda b: (b, 0)),
        ),
        compiler_params=pltpu.CompilerParams(
            dimension_semantics=("parallel",),   # v7x: shard batch over both TCs
        ),
    )(xt, pos, w1s, b1r, w2s, b2r)
    return out[:B]                               # drop batch padding


def ref_forward(x, w1, b1, w2, b2):
    """Plain-JAX reference mirroring the PyTorch module."""
    dn = ('NCH', 'OIH', 'NCH')
    h1 = jax.lax.conv_general_dilated(x, w1, (1,), [(1, 1)], dimension_numbers=dn)
    h1 = jax.nn.relu(h1 + b1[None, :, None])
    h2 = jax.lax.conv_general_dilated(h1, w2, (1,), [(1, 1)], dimension_numbers=dn)
    h2 = jax.nn.relu(h2 + b2[None, :, None])
    return jnp.max(h2, axis=-1)                  # AdaptiveMaxPool1d(1).squeeze(-1)


if __name__ == "__main__":
    C_IN = 4
    C_MID = 64 * 2        # conv1 out_channels
    OUT_DIM = 32          # output_dim

    key = jax.random.PRNGKey(0)
    kx, k1w, k1b, k2w, k2b, kx2 = jax.random.split(key, 6)

    # PyTorch-style uniform(-1/sqrt(fan_in*k), +...) init.
    bound1 = 1.0 / (C_IN * 3) ** 0.5
    bound2 = 1.0 / (C_MID * 3) ** 0.5
    w1 = jax.random.uniform(k1w, (C_MID, C_IN, 3), jnp.float32, -bound1, bound1)
    b1 = jax.random.uniform(k1b, (C_MID,), jnp.float32, -bound1, bound1)
    w2 = jax.random.uniform(k2w, (OUT_DIM, C_MID, 3), jnp.float32, -bound2, bound2)
    b2 = jax.random.uniform(k2b, (OUT_DIM,), jnp.float32, -bound2, bound2)

    # Case 1: the spec's toy shape (B=2, L=16) — single grid step.
    B, L = 2, 16
    x = jax.random.normal(kx, (B, C_IN, L), dtype=jnp.float32)
    out = jax.block_until_ready(local_cnn_forward(x, w1, b1, w2, b2))
    ref = jax.block_until_ready(ref_forward(x, w1, b1, w2, b2))
    assert out.shape == (B, OUT_DIM)
    assert jnp.allclose(out, ref, atol=1e-4, rtol=1e-4), "mismatch vs reference (case 1)"

    # Case 2: exercises multi-step grid + batch padding (B=20 -> TB=16, grid=2).
    B2 = 20
    x2 = jax.random.normal(kx2, (B2, C_IN, L), dtype=jnp.float32)
    out2 = jax.block_until_ready(local_cnn_forward(x2, w1, b1, w2, b2))
    ref2 = jax.block_until_ready(ref_forward(x2, w1, b1, w2, b2))
    assert out2.shape == (B2, OUT_DIM)
    assert jnp.allclose(out2, ref2, atol=1e-4, rtol=1e-4), "mismatch vs reference (case 2)"

    print("KERNEL_OK")
</pallas_src>

<mosaic_0001>
module attributes {stable_mosaic.version = 11 : i64} {
  func.func @local_cnn_kernel(%arg0: i32, %arg1: memref<32x4xf32, #tpu.memory_space<vmem>>, %arg2: memref<32x1xi32, #tpu.memory_space<vmem>>, %arg3: memref<3x4x128xf32, #tpu.memory_space<vmem>>, %arg4: memref<1x128xf32, #tpu.memory_space<vmem>>, %arg5: memref<3x128x32xf32, #tpu.memory_space<vmem>>, %arg6: memref<1x32xf32, #tpu.memory_space<vmem>>, %arg7: memref<2x32xf32, #tpu.memory_space<vmem>>) attributes {dimension_semantics = [#tpu.dimension_semantics<parallel>], iteration_bounds = array<i64: 1>, scalar_prefetch = 0 : i64, scratch_operands = 0 : i64, tpu.core_type = #tpu.core_type<tc>, window_params = [{transform_indices = @transform_0, window_bounds = array<i64: 32, 4>}, {pipeline_mode = #tpu.pipeline_mode<synchronous>, transform_indices = @transform_1, window_bounds = array<i64: 32, 1>}, {pipeline_mode = #tpu.pipeline_mode<synchronous>, transform_indices = @transform_2, window_bounds = array<i64: 3, 4, 128>}, {pipeline_mode = #tpu.pipeline_mode<synchronous>, transform_indices = @transform_3, window_bounds = array<i64: 1, 128>}, {pipeline_mode = #tpu.pipeline_mode<synchronous>, transform_indices = @transform_4, window_bounds = array<i64: 3, 128, 32>}, {pipeline_mode = #tpu.pipeline_mode<synchronous>, transform_indices = @transform_5, window_bounds = array<i64: 1, 32>}, {transform_indices = @transform_6, window_bounds = array<i64: 2, 32>}]} {
    %c0 = arith.constant 0 : index
    %c0_0 = arith.constant 0 : index
    %0 = vector.load %arg2[%c0, %c0_0] : memref<32x1xi32, #tpu.memory_space<vmem>>, vector<32x1xi32>
    %c0_i32 = arith.constant 0 : i32
    %1 = vector.broadcast %c0_i32 : i32 to vector<32x1xi32>
    %2 = arith.cmpi ne, %0, %1 : vector<32x1xi32>
    %c15_i32 = arith.constant 15 : i32
    %3 = vector.broadcast %c15_i32 : i32 to vector<32x1xi32>
    %4 = arith.cmpi ne, %0, %3 : vector<32x1xi32>
    %c0_1 = arith.constant 0 : index
    %c0_2 = arith.constant 0 : index
    %5 = vector.load %arg1[%c0_1, %c0_2] : memref<32x4xf32, #tpu.memory_space<vmem>>, vector<32x4xf32>
    %c1_i32 = arith.constant 1 : i32
    %6 = tpu.dynamic_rotate %5 by %c1_i32 dim 0 : vector<32x4xf32>, i32 -> vector<32x4xf32>
    %c0_i32_3 = arith.constant 0 : i32
    %7 = arith.sitofp %c0_i32_3 : i32 to f32
    %8 = vector.shape_cast %2 : vector<32x1xi1> to vector<32x1xi1>
    %9 = vector.broadcast %8 : vector<32x1xi1> to vector<32x4xi1>
    %10 = vector.broadcast %7 : f32 to vector<32x4xf32>
    %11 = arith.select %9, %6, %10 : vector<32x4xi1>, vector<32x4xf32>
    %c31_i32 = arith.constant 31 : i32
    %12 = tpu.dynamic_rotate %5 by %c31_i32 dim 0 : vector<32x4xf32>, i32 -> vector<32x4xf32>
    %c0_i32_4 = arith.constant 0 : i32
    %13 = arith.sitofp %c0_i32_4 : i32 to f32
    %14 = vector.shape_cast %4 : vector<32x1xi1> to vector<32x1xi1>
    %15 = vector.broadcast %14 : vector<32x1xi1> to vector<32x4xi1>
    %16 = vector.broadcast %13 : f32 to vector<32x4xf32>
    %17 = arith.select %15, %12, %16 : vector<32x4xi1>, vector<32x4xf32>
    %c1 = arith.constant 1 : index
    %c0_5 = arith.constant 0 : index
    %c0_6 = arith.constant 0 : index
    %18 = vector.load %arg3[%c1, %c0_5, %c0_6] : memref<3x4x128xf32, #tpu.memory_space<vmem>>, vector<1x4x128xf32>
    %19 = vector.shape_cast %18 : vector<1x4x128xf32> to vector<4x128xf32>
    %cst = arith.constant dense<0.000000e+00> : vector<32x128xf32>
    %20 = tpu.matmul %5, %19, %cst {dimension_numbers = #tpu.dot_dimension_numbers<[1], [0], [0], [1], [0, 0, 1, 1], [], []>} : vector<32x4xf32>, vector<4x128xf32>, vector<32x128xf32> -> vector<32x128xf32>
    %c0_7 = arith.constant 0 : index
    %c0_8 = arith.constant 0 : index
    %c0_9 = arith.constant 0 : index
    %21 = vector.load %arg3[%c0_7, %c0_8, %c0_9] : memref<3x4x128xf32, #tpu.memory_space<vmem>>, vector<1x4x128xf32>
    %22 = vector.shape_cast %21 : vector<1x4x128xf32> to vector<4x128xf32>
    %cst_10 = arith.constant dense<0.000000e+00> : vector<32x128xf32>
    %23 = tpu.matmul %11, %22, %cst_10 {dimension_numbers = #tpu.dot_dimension_numbers<[1], [0], [0], [1], [0, 0, 1, 1], [], []>} : vector<32x4xf32>, vector<4x128xf32>, vector<32x128xf32> -> vector<32x128xf32>
    %24 = arith.addf %20, %23 : vector<32x128xf32>
    %c2 = arith.constant 2 : index
    %c0_11 = arith.constant 0 : index
    %c0_12 = arith.constant 0 : index
    %25 = vector.load %arg3[%c2, %c0_11, %c0_12] : memref<3x4x128xf32, #tpu.memory_space<vmem>>, vector<1x4x128xf32>
    %26 = vector.shape_cast %25 : vector<1x4x128xf32> to vector<4x128xf32>
    %cst_13 = arith.constant dense<0.000000e+00> : vector<32x128xf32>
    %27 = tpu.matmul %17, %26, %cst_13 {dimension_numbers = #tpu.dot_dimension_numbers<[1], [0], [0], [1], [0, 0, 1, 1], [], []>} : vector<32x4xf32>, vector<4x128xf32>, vector<32x128xf32> -> vector<32x128xf32>
    %28 = arith.addf %24, %27 : vector<32x128xf32>
    %c0_14 = arith.constant 0 : index
    %c0_15 = arith.constant 0 : index
    %29 = vector.load %arg4[%c0_14, %c0_15] : memref<1x128xf32, #tpu.memory_space<vmem>>, vector<1x128xf32>
    %30 = vector.broadcast %29 : vector<1x128xf32> to vector<32x128xf32>
    %31 = arith.addf %28, %30 : vector<32x128xf32>
    %cst_16 = arith.constant 0.000000e+00 : f32
    %32 = vector.broadcast %cst_16 : f32 to vector<32x128xf32>
    %33 = arith.maximumf %31, %32 : vector<32x128xf32>
    %c0_17 = arith.constant 0 : index
    %c0_18 = arith.constant 0 : index
    %c0_19 = arith.constant 0 : index
    %34 = vector.load %arg5[%c0_17, %c0_18, %c0_19] : memref<3x128x32xf32, #tpu.memory_space<vmem>>, vector<1x128x32xf32>
    %35 = vector.shape_cast %34 : vector<1x128x32xf32> to vector<128x32xf32>
    %cst_20 = arith.constant dense<0.000000e+00> : vector<32x32xf32>
    %36 = tpu.matmul %33, %35, %cst_20 {dimension_numbers = #tpu.dot_dimension_numbers<[1], [0], [0], [1], [0, 0, 1, 1], [], []>} : vector<32x128xf32>, vector<128x32xf32>, vector<32x32xf32> -> vector<32x32xf32>
    %c1_21 = arith.constant 1 : index
    %c0_22 = arith.constant 0 : index
    %c0_23 = arith.constant 0 : index
    %37 = vector.load %arg5[%c1_21, %c0_22, %c0_23] : memref<3x128x32xf32, #tpu.memory_space<vmem>>, vector<1x128x32xf32>
    %38 = vector.shape_cast %37 : vector<1x128x32xf32> to vector<128x32xf32>
    %cst_24 = arith.constant dense<0.000000e+00> : vector<32x32xf32>
    %39 = tpu.matmul %33, %38, %cst_24 {dimension_numbers = #tpu.dot_dimension_numbers<[1], [0], [0], [1], [0, 0, 1, 1], [], []>} : vector<32x128xf32>, vector<128x32xf32>, vector<32x32xf32> -> vector<32x32xf32>
    %c2_25 = arith.constant 2 : index
    %c0_26 = arith.constant 0 : index
    %c0_27 = arith.constant 0 : index
    %40 = vector.load %arg5[%c2_25, %c0_26, %c0_27] : memref<3x128x32xf32, #tpu.memory_space<vmem>>, vector<1x128x32xf32>
    %41 = vector.shape_cast %40 : vector<1x128x32xf32> to vector<128x32xf32>
    %cst_28 = arith.constant dense<0.000000e+00> : vector<32x32xf32>
    %42 = tpu.matmul %33, %41, %cst_28 {dimension_numbers = #tpu.dot_dimension_numbers<[1], [0], [0], [1], [0, 0, 1, 1], [], []>} : vector<32x128xf32>, vector<128x32xf32>, vector<32x32xf32> -> vector<32x32xf32>
    %c1_i32_29 = arith.constant 1 : i32
    %43 = tpu.dynamic_rotate %36 by %c1_i32_29 dim 0 : vector<32x32xf32>, i32 -> vector<32x32xf32>
    %cst_30 = arith.constant 0.000000e+00 : f32
    %44 = vector.shape_cast %2 : vector<32x1xi1> to vector<32x1xi1>
    %45 = vector.broadcast %44 : vector<32x1xi1> to vector<32x32xi1>
    %46 = vector.broadcast %cst_30 : f32 to vector<32x32xf32>
    %47 = arith.select %45, %43, %46 : vector<32x32xi1>, vector<32x32xf32>
    %48 = arith.addf %39, %47 : vector<32x32xf32>
    %c31_i32_31 = arith.constant 31 : i32
    %49 = tpu.dynamic_rotate %42 by %c31_i32_31 dim 0 : vector<32x32xf32>, i32 -> vector<32x32xf32>
    %cst_32 = arith.constant 0.000000e+00 : f32
    %50 = vector.shape_cast %4 : vector<32x1xi1> to vector<32x1xi1>
    %51 = vector.broadcast %50 : vector<32x1xi1> to vector<32x32xi1>
    %52 = vector.broadcast %cst_32 : f32 to vector<32x32xf32>
    %53 = arith.select %51, %49, %52 : vector<32x32xi1>, vector<32x32xf32>
    %54 = arith.addf %48, %53 : vector<32x32xf32>
    %c0_33 = arith.constant 0 : index
    %c0_34 = arith.constant 0 : index
    %55 = vector.load %arg6[%c0_33, %c0_34] : memref<1x32xf32, #tpu.memory_space<vmem>>, vector<1x32xf32>
    %56 = vector.broadcast %55 : vector<1x32xf32> to vector<32x32xf32>
    %57 = arith.addf %54, %56 : vector<32x32xf32>
    %cst_35 = arith.constant 0.000000e+00 : f32
    %58 = vector.broadcast %cst_35 : f32 to vector<32x32xf32>
    %59 = arith.maximumf %57, %58 : vector<32x32xf32>
    %60 = vector.shape_cast %59 : vector<32x32xf32> to vector<2x16x32xf32>
    %cst_36 = arith.constant dense<0xFF800000> : vector<2x32xf32>
    %61 = vector.multi_reduction <maximumf>, %60, %cst_36 [1] : vector<2x16x32xf32> to vector<2x32xf32>
    %c0_37 = arith.constant 0 : index
    %c0_38 = arith.constant 0 : index
    %62 = vector.load %arg7[%c0_37, %c0_38] : memref<2x32xf32, #tpu.memory_space<vmem>>, vector<2x32xf32>
    tpu.vector_store %arg7[%c0_37, %c0_38], %61 {strides = array<i32>} : memref<2x32xf32, #tpu.memory_space<vmem>>, vector<2x32xf32>,
    return
  }
  func.func @transform_0(%arg0: i32) -> (i32, i32) {
    %c0_i32 = arith.constant 0 : i32
    %c0_i32_0 = arith.constant 0 : i32
    return %arg0, %c0_i32 : i32, i32
  }
  func.func @transform_1(%arg0: i32) -> (i32, i32) {
    %c0_i32 = arith.constant 0 : i32
    %c0_i32_0 = arith.constant 0 : i32
    %c0_i32_1 = arith.constant 0 : i32
    return %c0_i32, %c0_i32_0 : i32, i32
  }
  func.func @transform_2(%arg0: i32) -> (i32, i32, i32) {
    %c0_i32 = arith.constant 0 : i32
    %c0_i32_0 = arith.constant 0 : i32
    %c0_i32_1 = arith.constant 0 : i32
    %c0_i32_2 = arith.constant 0 : i32
    return %c0_i32, %c0_i32_0, %c0_i32_1 : i32, i32, i32
  }
  func.func @transform_3(%arg0: i32) -> (i32, i32) {
    %c0_i32 = arith.constant 0 : i32
    %c0_i32_0 = arith.constant 0 : i32
    %c0_i32_1 = arith.constant 0 : i32
    return %c0_i32, %c0_i32_0 : i32, i32
  }
  func.func @transform_4(%arg0: i32) -> (i32, i32, i32) {
    %c0_i32 = arith.constant 0 : i32
    %c0_i32_0 = arith.constant 0 : i32
    %c0_i32_1 = arith.constant 0 : i32
    %c0_i32_2 = arith.constant 0 : i32
    return %c0_i32, %c0_i32_0, %c0_i32_1 : i32, i32, i32
  }
  func.func @transform_5(%arg0: i32) -> (i32, i32) {
    %c0_i32 = arith.constant 0 : i32
    %c0_i32_0 = arith.constant 0 : i32
    %c0_i32_1 = arith.constant 0 : i32
    return %c0_i32, %c0_i32_0 : i32, i32
  }
  func.func @transform_6(%arg0: i32) -> (i32, i32) {
    %c0_i32 = arith.constant 0 : i32
    %c0_i32_0 = arith.constant 0 : i32
    return %arg0, %c0_i32 : i32, i32
  }
}

</mosaic_0001>

<bundles_post_ra>
// kernel: tpu_custom_call.1
= control target key start
LH: loop header
LB: loop body
LE: loop exit
PB: predicated region body
PF: predicated region fallthrough
CT: control target
= control target key end

     0   :  { %v1218_v3 = vmov 0   ;;  %s1578_s0 = inlined_call_operand.vmem [shape: f32[32,4], index: 0, kind: input, shape index: {}]   ;;  %s1579_s1 = inlined_call_operand.vmem [shape: s32[32,1], index: 1, kind: input, shape index: {}]   ;;  %s1580_s2 = inlined_call_operand.vmem [shape: f32[3,4,128], index: 2, kind: input, shape index: {}]   ;;  %s1581_s3 = inlined_call_operand.vmem [shape: f32[1,128], index: 3, kind: input, shape index: {}]   ;;  %s1582_s4 = inlined_call_operand.vmem [shape: f32[3,128,32], index: 4, kind: input, shape index: {}]   ;;  %s1583_s5 = inlined_call_operand.vmem [shape: f32[1,32], index: 5, kind: input, shape index: {}]   ;;  %s1584_s6 = inlined_call_operand.hbm [shape: f32[2,32], index: 6, kind: output, shape index: {}]  }
   0x1   :  { %v26_v0 = vld [vmem:[%s1579_s1 + $0x10] sm:$0xff]  ;;  %v24_v1 = vld [vmem:[%s1579_s1] sm:$0xff]  ;;  %v27_v2 = vld [vmem:[%s1579_s1 + $0x18] sm:$0xff]  ;;  %1193 = vset.pattern.permute.xlu1 %v1218_v3  ;;  %1192 = vset.pattern.permute.xlu0 %v1218_v3 }
   0x2   :  { %vm30_vm0 = vcmp.ne.s32.totalorder %v26_v0, 0  ;;  %vm28_vm1 = vcmp.ne.s32.totalorder %v24_v1, 0  ;;  %vm31_vm2 = vcmp.ne.s32.totalorder %v27_v2, 0  ;;  %v25_v4 = vld [vmem:[%s1579_s1 + $0x8] sm:$0xff] }
   0x3   :  { %v53_v5 = vsel %vm30_vm0, 1, %v1218_v3  ;;  %v51_v6 = vsel %vm28_vm1, 1, %v1218_v3  ;;  %vm29_vm3 = vcmp.ne.s32.totalorder %v25_v4, 0  ;;  %v54_v7 = vsel %vm31_vm2, 1, %v1218_v3 }
   0x4   :  { %62 = vperm.xlu1 %1193, %v53_v5   ;;  %56 = vperm.xlu0 %1192, %v51_v6   ;;  %v52_v8 = vsel %vm29_vm3, 1, %v1218_v3 }
   0x5   :  { %11 = vsyncpa [#allocation3], 0  ;;  %vm33_vm4 = vcmp.ne.s32.totalorder %v25_v4, 15  ;;  %vm32_vm5 = vcmp.ne.s32.totalorder %v24_v1, 15  ;;  %v110_v9 = vld [vmem:[%s1580_s2] sm:$0xf]  ;;  %v44_v36 = vlaneseq }
   0x6   :  { %vm124_vm6 = vcmask 1043456   ;;  %v85_v10 = vsel %vm33_vm4, 1, %v1218_v3  ;;  %v84_v11 = vsel %vm32_vm5, 1, %v1218_v3  ;;  %v1274_v12 = vld [vmem:[%s1580_s2 + $0x4] sm:$0xf]  ;;  %vm35_vm7 = vcmp.ne.s32.totalorder %v27_v2, 15 }
   0x7   :  { %948 = vmatprep.subr.msk.mxu0 %vm124_vm6, %v110_v9  ;;  %vm34_vm8 = vcmp.ne.s32.totalorder %v26_v0, 15  ;;  %v87_v13 = vsel %vm35_vm7, 1, %v1218_v3  ;;  %v434_v15 = vld [vmem:[%s1582_s4] sm:$0xff]  ;;  %v435_v16 = vld [vmem:[%s1582_s4 + $0x8] sm:$0xff]  ;;  %v436_v18 = vld [vmem:[%s1582_s4 + $0x10] sm:$0xff]  ;;  %v1321_v37 = vshrl.u32 %v44_v36, 7 }
   0x8   :  { %65 = vperm.xlu1 %1193, %v54_v7   ;;  %59 = vperm.xlu0 %1192, %v52_v8   ;;  %v86_v14 = vsel %vm34_vm8, 1, %v1218_v3  ;;  %v1086_v17 = vpack.c.bf16 %v435_v16, %v434_v15  ;;  %v437_v19 = vld [vmem:[%s1582_s4 + $0x18] sm:$0xff]  ;;  %v438_v21 = vld [vmem:[%s1582_s4 + $0x20] sm:$0xff]  ;;  %v439_v22 = vld [vmem:[%s1582_s4 + $0x28] sm:$0xff]  ;;  %vm111_vm10 = vcmask 31744   ;;  %vm782_vm4 = vcmask 261120  }
   0x9   :  { %949 = vmatpush3.msk.msra.mxu0 %vm124_vm6, %v110_v9  ;;  %v1090_v20 = vpack.c.bf16 %v437_v19, %v436_v18  ;;  %v1094_v23 = vpack.c.bf16 %v439_v22, %v438_v21  ;;  %v440_v24 = vld [vmem:[%s1582_s4 + $0x30] sm:$0xff]  ;;  %v441_v25 = vld [vmem:[%s1582_s4 + $0x38] sm:$0xff]  ;;  %v442_v27 = vld [vmem:[%s1582_s4 + $0x40] sm:$0xff]  ;;  %vm46_vm9 = vcmp.lt.s32.totalorder %v1321_v37, 1  ;;  %vm79_vm15 = vcmp.lt.s32.totalorder %v1321_v37, 7 }
   0xa   :  { %956 = vmatprep.subr.msk.mxu0 %vm124_vm6, %v1274_v12  ;;  %1087 = vmatprep.subr.bf16.mxu1 %v1086_v17  ;;  %v1098_v26 = vpack.c.bf16 %v441_v25, %v440_v24  ;;  %v443_v28 = vld [vmem:[%s1582_s4 + $0x48] sm:$0xff]  ;;  %v444_v30 = vld [vmem:[%s1582_s4 + $0x50] sm:$0xff]  ;;  %v445_v31 = vld [vmem:[%s1582_s4 + $0x58] sm:$0xff]  ;;  %vm803_vm5 = vcmask 1041409  }
   0xb   :  { %1089 = vmatpush3.bf16.msra.mxu1 %v1086_v17  ;;  %v1102_v29 = vpack.c.bf16 %v443_v28, %v442_v27  ;;  %v1106_v32 = vpack.c.bf16 %v445_v31, %v444_v30  ;;  %v446_v33 = vld [vmem:[%s1582_s4 + $0x60] sm:$0xff]  ;;  %v447_v34 = vld [vmem:[%s1582_s4 + $0x68] sm:$0xff]  ;;  %v1331_v39 = vld [vmem:[%s1578_s0 + $0x18] sm:$0xff] }
   0xc   :  { %92 = vperm.xlu1 %1193, %v85_v10   ;;  %89 = vperm.xlu0 %1192, %v84_v11   ;;  %v1110_v35 = vpack.c.bf16 %v447_v34, %v446_v33  ;;  %v1326_v38 = vld [vmem:[%s1578_s0] sm:$0xff]  ;;  %v37_v40 = vld [vmem:[%s1578_s0 + $0x8] sm:$0xff]  ;;  %v38_v41 = vld [vmem:[%s1578_s0 + $0x10] sm:$0xff]  ;;  %v43_v43 = vrot.slane %v1331_v39, 7  ;;  %v78_v4 = vrot.slane %v1331_v39, 1 }
   0xd   :  { %1091 = vmatprep.subr.bf16.mxu1 %v1090_v20  ;;  %v40_v42 = vrot.slane %v1326_v38, 7  ;;  %v41_v44 = vrot.slane %v37_v40, 7  ;;  %v42_v45 = vrot.slane %v38_v41, 7  ;;  %v833_v56 = vld [vmem:[%s1580_s2 + $0x8] sm:$0xf]  ;;  %v856_v59 = vld [vmem:[%s1582_s4 + $0x100] sm:$0xff] }
   0xe   :  { %v857_v60 = vld [vmem:[%s1582_s4 + $0x108] sm:$0xff]  ;;  %v76_v62 = vrot.slane %v37_v40, 1  ;;  %v75_v63 = vrot.slane %v1326_v38, 1  ;;  %v77_v2 = vrot.slane %v38_v41, 1  ;;  %v858_v6 = vld [vmem:[%s1582_s4 + $0x110] sm:$0xff]  ;;  %v859_v7 = vld [vmem:[%s1582_s4 + $0x118] sm:$0xff] }
   0xf   :  { %1093 = vmatpush3.bf16.msra.mxu1 %v1090_v20  ;;  %v50_v46 = vsel %vm46_vm9, %v43_v43, %v40_v42  ;;  %v48_v49 = vsel %vm46_vm9, %v41_v44, %v42_v45  ;;  %v49_v51 = vsel %vm46_vm9, %v40_v42, %v41_v44  ;;  %v47_v57 = vsel %vm46_vm9, %v42_v45, %v43_v43  ;;  %v861_v15 = vld [vmem:[%s1582_s4 + $0x128] sm:$0xff]  ;;  %v862_v20 = vld [vmem:[%s1582_s4 + $0x130] sm:$0xff]  ;;  %v863_v21 = vld [vmem:[%s1582_s4 + $0x138] sm:$0xff] }
  0x10   :  { %98 = vperm.xlu1 %1193, %v87_v13   ;;  %95 = vperm.xlu0 %1192, %v86_v14   ;;  %v1118_v0 = vpack.c.bf16 %v857_v60, %v856_v59  ;;  %v82_v3 = vsel %vm79_vm15, %v75_v63, %v76_v62  ;;  %v81_v8 = vsel %vm79_vm15, %v76_v62, %v77_v2  ;;  %v860_v14 = vld [vmem:[%s1582_s4 + $0x120] sm:$0xff]  ;;  %v865_v24 = vld [vmem:[%s1582_s4 + $0x148] sm:$0xff]  ;;  %v867_v27 = vld [vmem:[%s1582_s4 + $0x158] sm:$0xff] }
  0x11   :  { %1095 = vmatprep.subr.bf16.mxu1 %v1094_v23  ;;  %v80_v11 = vsel %vm79_vm15, %v77_v2, %v78_v4  ;;  %v83_v16 = vsel %vm79_vm15, %v78_v4, %v75_v63  ;;  %v1126_v18 = vpack.c.bf16 %v861_v15, %v860_v14  ;;  %v1130_v22 = vpack.c.bf16 %v863_v21, %v862_v20  ;;  %v869_v30 = vld [vmem:[%s1582_s4 + $0x168] sm:$0xff]  ;;  %v449_v33 = vld [vmem:[%s1582_s4 + $0x78] sm:$0xff]  ;;  %v839_v42 = vld [vmem:[%s1581_s3] ss:$0 sm:$0xff] }
  0x12   :  { %v871_v36 = vld [vmem:[%s1582_s4 + $0x178] sm:$0xff]  ;;  %v844_v60 = vld [vmem:[%s1582_s4 + $0xa0] sm:$0xff]  ;;  %v845_v62 = vld [vmem:[%s1582_s4 + $0xa8] sm:$0xff] }
  0x13   :  { %1097 = vmatpush3.bf16.msra.mxu1 %v1094_v23  ;;  %v864_v23 = vld [vmem:[%s1582_s4 + $0x140] sm:$0xff]  ;;  %v1158_v2 = vpack.c.bf16 %v845_v62, %v844_v60  ;;  %v847_v4 = vld [vmem:[%s1582_s4 + $0xb8] sm:$0xff]  ;;  %v853_v15 = vld [vmem:[%s1582_s4 + $0xe8] sm:$0xff] }
  0x14   :  { %1099 = vmatprep.subr.bf16.mxu1 %v1098_v26  ;;  %v1134_v25 = vpack.c.bf16 %v865_v24, %v864_v23  ;;  %v852_v14 = vld [vmem:[%s1582_s4 + $0xe0] sm:$0xff] }
  0x17   :  { %1101 = vmatpush3.bf16.msra.mxu1 %v1098_v26  ;;  %v866_v26 = vld [vmem:[%s1582_s4 + $0x150] sm:$0xff] }
  0x18   :  { %1103 = vmatprep.subr.bf16.mxu1 %v1102_v29  ;;  %v1138_v28 = vpack.c.bf16 %v867_v27, %v866_v26 }
  0x1b   :  { %1105 = vmatpush3.bf16.msra.mxu1 %v1102_v29  ;;  %v868_v29 = vld [vmem:[%s1582_s4 + $0x160] sm:$0xff] }
  0x1c   :  { %1107 = vmatprep.subr.bf16.mxu1 %v1106_v32  ;;  %v1142_v31 = vpack.c.bf16 %v869_v30, %v868_v29 }
  0x1f   :  { %1109 = vmatpush3.bf16.msra.mxu1 %v1106_v32  ;;  %v448_v32 = vld [vmem:[%s1582_s4 + $0x70] sm:$0xff] }
  0x20   :  { %1111 = vmatprep.subr.bf16.mxu1 %v1110_v35  ;;  %v1114_v34 = vpack.c.bf16 %v449_v33, %v448_v32 }
  0x23   :  { %1113 = vmatpush3.bf16.msra.mxu1 %v1110_v35  ;;  %v870_v35 = vld [vmem:[%s1582_s4 + $0x170] sm:$0xff] }
  0x24   :  { %1115 = vmatprep.subr.bf16.mxu1 %v1114_v34 }
  0x27   :  { %1117 = vmatpush3.bf16.msra.mxu1 %v1114_v34 }
  0x83   :  { %v1344_v47 = vpop.permute.xlu1 %62  ;;  %v1346_v48 = vpop.permute.xlu0 %56 }
  0x84   :  { %vm67_vm11 = vcmp.eq.s32.totalorder %v1346_v48, 1  ;;  %vm69_vm12 = vcmp.eq.s32.totalorder %v1344_v47, 1 }
  0x85   :  { %v71_v50 = vsel %vm67_vm11, %v50_v46, 0.0  ;;  %v73_v54 = vsel %vm69_vm12, %v48_v49, 0.0  ;;  %v842_v49 = vld [vmem:[%s1582_s4 + $0x90] sm:$0xff] }
  0x86   :  { %950 = vmatprep.mubr.msk.f32.mxu0 %vm111_vm10, %v71_v50  ;;  %v843_v50 = vld [vmem:[%s1582_s4 + $0x98] sm:$0xff] }
  0x87   :  { %v1357_v52 = vpop.permute.xlu1 %65  ;;  %v1359_v53 = vpop.permute.xlu0 %59 }
  0x88   :  { %vm68_vm13 = vcmp.eq.s32.totalorder %v1359_v53, 1  ;;  %vm70_vm14 = vcmp.eq.s32.totalorder %v1357_v52, 1 }
  0x89   :  { %v72_v55 = vsel %vm68_vm13, %v49_v51, 0.0  ;;  %v74_v58 = vsel %vm70_vm14, %v47_v57, 0.0 }
  0x8a   :  { %951 = vmatmul.mubr.msk.f32.vlgmr.msra.gmra.mrb[0].mxu0 %vm111_vm10, %v72_v55 }
  0x8b   :  { %957 = vmatpush3.msk.msra.mxu0 %vm124_vm6, %v1274_v12  ;;  %953 = vmatprep.mubr.msk.f32.mxu0 %vm111_vm10, %v73_v54  ;;  %v1385_v61 = vpop.permute.xlu0 %89  ;;  %v1392_v1 = vpop.permute.xlu1 %92  ;;  %v1122_v12 = vpack.c.bf16 %v859_v7, %v858_v6  ;;  %v848_v7 = vld [vmem:[%s1582_s4 + $0xc0] sm:$0xff] }
  0x8c   :  { %964 = vmatprep.subr.msk.mxu0 %vm124_vm6, %v833_v56  ;;  %vm100_vm0 = vcmp.eq.s32.totalorder %v1385_v61, 1  ;;  %vm101_vm1 = vcmp.eq.s32.totalorder %v1392_v1, 1 }
  0x8d   :  { %v104_v9 = vsel %vm100_vm0, %v82_v3, 0.0  ;;  %v105_v13 = vsel %vm101_vm1, %v81_v8, 0.0  ;;  %v846_v3 = vld [vmem:[%s1582_s4 + $0xb0] sm:$0xff]  ;;  %v849_v8 = vld [vmem:[%s1582_s4 + $0xc8] sm:$0xff] }
  0x8e   :  { %954 = vmatmul.mubr.msk.f32.gmra.mrb[2].mxu0 %vm111_vm10, %v74_v58  ;;  %v1154_v58 = vpack.c.bf16 %v843_v50, %v842_v49  ;;  %v1162_v6 = vpack.c.bf16 %v847_v4, %v846_v3 }
  0x8f   :  { %958 = vmatprep.mubr.msk.f32.mxu0 %vm111_vm10, %v1326_v38  ;;  %v1401_v5 = vpop.permute.xlu0 %95  ;;  %v1416_v10 = vpop.permute.xlu1 %98  ;;  %v1146_v38 = vpack.c.bf16 %v871_v36, %v870_v35 }
  0x90   :  { %vm102_vm2 = vcmp.eq.s32.totalorder %v1401_v5, 1  ;;  %vm103_vm3 = vcmp.eq.s32.totalorder %v1416_v10, 1 }
  0x91   :  { %v106_v17 = vsel %vm102_vm2, %v80_v11, 0.0  ;;  %v107_v19 = vsel %vm103_vm3, %v83_v16, 0.0  ;;  %v850_v11 = vld [vmem:[%s1582_s4 + $0xd0] sm:$0xff]  ;;  %v1174_v16 = vpack.c.bf16 %v853_v15, %v852_v14 }
  0x92   :  { %959 = vmatmul.mubr.msk.f32.vlgmr.msra.gmra.mrb[0].mxu0 %vm111_vm10, %v37_v40  ;;  %v841_v40 = vld [vmem:[%s1582_s4 + $0x88] sm:$0xff] }
  0x93   :  { %965 = vmatpush3.msk.msra.mxu0 %vm124_vm6, %v833_v56  ;;  %961 = vmatprep.mubr.msk.f32.mxu0 %vm111_vm10, %v38_v41  ;;  %vm806_vm6 = vcmask 254976  }
  0x94   :  { %1119 = vmatprep.subr.bf16.mxu0 %v1118_v0 }
  0x96   :  { %962 = vmatmul.mubr.msk.f32.gmra.mrb[2].mxu0 %vm111_vm10, %v1331_v39  ;;  %v840_v39 = vld [vmem:[%s1582_s4 + $0x80] sm:$0xff] }
  0x97   :  { %966 = vmatprep.mubr.msk.f32.mxu0 %vm111_vm10, %v104_v9  ;;  %v1150_v41 = vpack.c.bf16 %v841_v40, %v840_v39  ;;  %v1166_v9 = vpack.c.bf16 %v849_v8, %v848_v7 }
  0x99   :  { %1151 = vmatprep.subr.bf16.mxu1 %v1150_v41 }
  0x9a   :  { %967 = vmatmul.mubr.msk.f32.vlgmr.msra.gmra.mrb[0].mxu0 %vm111_vm10, %v105_v13 }
  0x9b   :  { %969 = vmatprep.mubr.msk.f32.mxu0 %vm111_vm10, %v106_v17  ;;  %1121 = vmatpush3.bf16.msra.mxu0 %v1118_v0  ;;  %v854_v17 = vld [vmem:[%s1582_s4 + $0xf0] sm:$0xff] }
  0x9c   :  { %1123 = vmatprep.subr.bf16.mxu0 %v1122_v12 }
  0x9e   :  { %970 = vmatmul.mubr.msk.f32.gmra.mrb[2].mxu0 %vm111_vm10, %v107_v19 }
  0x9f   :  { %1125 = vmatpush3.bf16.msra.mxu0 %v1122_v12  ;;  %v851_v12 = vld [vmem:[%s1582_s4 + $0xd8] sm:$0xff] }
  0xa0   :  { %1127 = vmatprep.subr.bf16.mxu0 %v1126_v18  ;;  %v1170_v13 = vpack.c.bf16 %v851_v12, %v850_v11 }
  0xa3   :  { %1129 = vmatpush3.bf16.msra.mxu0 %v1126_v18  ;;  %v855_v18 = vld [vmem:[%s1582_s4 + $0xf8] sm:$0xff] }
  0xa4   :  { %1131 = vmatprep.subr.bf16.mxu0 %v1130_v22  ;;  %v1178_v19 = vpack.c.bf16 %v855_v18, %v854_v17 }
  0xa7   :  { %1133 = vmatpush3.bf16.msra.mxu0 %v1130_v22 }
  0xa8   :  { %1135 = vmatprep.subr.bf16.mxu0 %v1134_v25 }
  0xab   :  { %1137 = vmatpush3.bf16.msra.mxu0 %v1134_v25 }
  0xac   :  { %1139 = vmatprep.subr.bf16.mxu0 %v1138_v28 }
  0xaf   :  { %1141 = vmatpush3.bf16.msra.mxu0 %v1138_v28 }
  0xb0   :  { %1143 = vmatprep.subr.bf16.mxu0 %v1142_v31 }
  0xb3   :  { %1145 = vmatpush3.bf16.msra.mxu0 %v1142_v31 }
  0xb4   :  { %1147 = vmatprep.subr.bf16.mxu0 %v1146_v38 }
  0xb7   :  { %1149 = vmatpush3.bf16.msra.mxu0 %v1146_v38 }
 0x16d   :  { %v968_v43 = vpop.f32.mrb[0].mxu0 }
 0x16e   :  { %v427_v44 = vadd.f32 %v968_v43, %v839_v42  ;;  %v396_v45 = vpop.f32.mrb[1].mxu0 }
 0x16f   :  { %v426_v46 = vadd.f32 %v839_v42, %v396_v45 }
 0x170   :  { %v431_v55 = vmax.f32 %v427_v44, 0.0 }
 0x171   :  { %v430_v51 = vmax.f32 %v426_v46, 0.0  ;;  %v971_v54 = vpop.f32.mrb[2].mxu0 }
 0x172   :  { %v429_v56 = vadd.f32 %v971_v54, %v839_v42  ;;  %v406_v57 = vpop.f32.mrb[3].mxu0 }
 0x173   :  { %v428_v59 = vadd.f32 %v839_v42, %v406_v57  ;;  %1004 = vmatprep.mubr.f32.mxu1 %v430_v51  ;;  %1042 = vmatprep.mubr.f32.mxu0 %v430_v51 }
 0x174   :  { %1005 = vmatmul.mubr.f32.vlgmr.msra.gmra.mrb[0].mxu1 %v431_v55  ;;  %1043 = vmatmul.mubr.f32.vlgmr.msra.gmra.mrb[4].mxu0 %v431_v55  ;;  %v433_v0 = vmax.f32 %v429_v56, 0.0 }
 0x175   :  { %v432_v63 = vmax.f32 %v428_v59, 0.0  ;;  %1153 = vmatpush3.bf16.msra.mxu1 %v1150_v41 }
 0x176   :  { %1155 = vmatprep.subr.bf16.mxu1 %v1154_v58 }
 0x177   :  { %1007 = vmatprep.mubr.f32.mxu1 %v432_v63  ;;  %1045 = vmatprep.mubr.f32.mxu0 %v432_v63 }
 0x178   :  { %1008 = vmatmul.mubr.f32.gmra.mrb[2].mxu1 %v433_v0  ;;  %1046 = vmatmul.mubr.f32.gmra.mrb[6].mxu0 %v433_v0 }
 0x179   :  { %1157 = vmatpush3.bf16.msra.mxu1 %v1154_v58  ;;  %1080 = vmatprep.mubr.f32.mxu1 %v430_v51 }
 0x17a   :  { %1159 = vmatprep.subr.bf16.mxu1 %v1158_v2 }
 0x17d   :  { %1161 = vmatpush3.bf16.msra.mxu1 %v1158_v2 }
 0x17e   :  { %1163 = vmatprep.subr.bf16.mxu1 %v1162_v6 }
 0x181   :  { %1165 = vmatpush3.bf16.msra.mxu1 %v1162_v6 }
 0x182   :  { %1167 = vmatprep.subr.bf16.mxu1 %v1166_v9 }
 0x185   :  { %1169 = vmatpush3.bf16.msra.mxu1 %v1166_v9 }
 0x186   :  { %1171 = vmatprep.subr.bf16.mxu1 %v1170_v13 }
 0x189   :  { %1173 = vmatpush3.bf16.msra.mxu1 %v1170_v13 }
 0x18a   :  { %1175 = vmatprep.subr.bf16.mxu1 %v1174_v16 }
 0x18d   :  { %1177 = vmatpush3.bf16.msra.mxu1 %v1174_v16 }
 0x18e   :  { %1179 = vmatprep.subr.bf16.mxu1 %v1178_v19 }
 0x191   :  { %1181 = vmatpush3.bf16.msra.mxu1 %v1178_v19 }
 0x194   :  { %1081 = vmatmul.mubr.f32.vlgmr.msra.gmra.mrb[4].mxu1 %v431_v55  ;;  %v872_v55 = vld [vmem:[%s1583_s5] ss:$0 sm:$0xff]  ;;  %s1219_s5 = smov [#allocation2]  }
 0x195   :  { %1083 = vmatprep.mubr.f32.mxu1 %v432_v63  ;;  %s814_s10 = sshll.u32 %s1219_s5, 4  ;;  %s815_s10 = int_to_ptr.vmem [resolvable:$true] %s814_s10 }
 0x196   :  { %s1194_s11 = scalar_lea.vmem %s815_s10, 32  ;;  %p1199_p1 = scmp.lt.s32.totalorder %s815_s10, %s815_s10 }
 0x197   :  { %p1195_p0 = scmp.ne.s32.totalorder %s815_s10, %s1194_s11  ;;  %p1200_p2 = scmp.lt.s32.totalorder %s1194_s11, %s1194_s11 }
 0x198   :  { %1084 = vmatmul.mubr.f32.gmra.mrb[6].mxu1 %v433_v0 }
 0x199   :  { %p1201_p3 = por %p1200_p2, %p1199_p1 }
 0x19b   :  { %p1202_p4 = pnand %p1201_p3, %p1195_p0 }
 0x247   :  { %v1006_v20 = vpop.f32.mrb[0].mxu1  ;;  %v1044_v21 = vpop.f32.mrb[4].mxu0 }
 0x248   :  { %v655_v22 = vrot.slane %v1006_v20, 7  ;;  %v752_v23 = vrot.slane %v1044_v21, 1  ;;  %v516_v24 = vpop.f32.mrb[1].mxu1  ;;  %v635_v25 = vpop.f32.mrb[5].mxu0 }
 0x249   :  { %v654_v26 = vrot.slane %v516_v24, 7  ;;  %v751_v27 = vrot.slane %v635_v25, 1 }
 0x24b   :  { %v1009_v28 = vpop.f32.mrb[2].mxu1  ;;  %v1047_v29 = vpop.f32.mrb[6].mxu0  ;;  %v660_v30 = vsel %vm46_vm9, %v654_v26, %v655_v22  ;;  %v757_v31 = vsel %vm79_vm15, %v751_v27, %v752_v23 }
 0x24c   :  { %v657_v32 = vrot.slane %v1009_v28, 7  ;;  %v754_v33 = vrot.slane %v1047_v29, 1  ;;  %v526_v34 = vpop.f32.mrb[3].mxu1  ;;  %v645_v35 = vpop.f32.mrb[7].mxu0  ;;  %v663_v45 = vsel %vm68_vm13, %v660_v30, 0.0  ;;  %v759_v37 = vsel %vm100_vm0, %v757_v31, 0.0 }
 0x24d   :  { %v656_v36 = vrot.slane %v526_v34, 7  ;;  %v753_v38 = vrot.slane %v645_v35, 1 }
 0x24e   :  { %v661_v39 = vsel %vm46_vm9, %v657_v32, %v654_v26  ;;  %v758_v40 = vsel %vm79_vm15, %v754_v33, %v751_v27 }
 0x24f   :  { %v755_v41 = vsel %vm79_vm15, %v753_v38, %v754_v33  ;;  %v756_v42 = vsel %vm79_vm15, %v752_v23, %v753_v38  ;;  %v658_v43 = vsel %vm46_vm9, %v656_v36, %v657_v32  ;;  %v659_v44 = vsel %vm46_vm9, %v655_v22, %v656_v36 }
 0x250   :  { %v662_v50 = vsel %vm67_vm11, %v661_v39, 0.0  ;;  %v760_v54 = vsel %vm101_vm1, %v756_v42, 0.0  ;;  %v665_v58 = vsel %vm70_vm14, %v658_v43, 0.0  ;;  %v664_v1 = vsel %vm69_vm12, %v659_v44, 0.0 }
 0x251   :  { %v762_v0 = vsel %vm103_vm3, %v758_v40, 0.0  ;;  %v761_v4 = vsel %vm102_vm2, %v755_v41, 0.0 }
 0x267   :  { %v1082_v46 = vpop.f32.mrb[4].mxu1 }
 0x268   :  { %v738_v49 = vadd.f32 %v1082_v46, %v663_v45  ;;  %v732_v51 = vpop.f32.mrb[5].mxu1 }
 0x269   :  { %v733_v56 = vadd.f32 %v732_v51, %v662_v50 }
 0x26a   :  { %v764_v57 = vadd.f32 %v760_v54, %v738_v49 }
 0x26b   :  { %v763_v53 = vadd.f32 %v759_v37, %v733_v56  ;;  %v1085_v59 = vpop.f32.mrb[6].mxu1 }
 0x26c   :  { %v775_v48 = vadd.f32 %v872_v55, %v764_v57  ;;  %v748_v60 = vadd.f32 %v1085_v59, %v665_v58  ;;  %v742_v62 = vpop.f32.mrb[7].mxu1 }
 0x26d   :  { %v774_v63 = vadd.f32 %v872_v55, %v763_v53  ;;  %v743_v2 = vadd.f32 %v742_v62, %v664_v1 }
 0x26e   :  { %v779_v3 = vmax.f32 %v775_v48, 0.0  ;;  %v766_v61 = vadd.f32 %v762_v0, %v748_v60 }
 0x26f   :  { %v778_v52 = vmax.f32 %v774_v63, 0.0  ;;  %v765_v6 = vadd.f32 %v761_v4, %v743_v2 }
 0x270   :  { %v784_v7 = vsel %vm782_vm4, %v779_v3, -inf  ;;  %v777_v8 = vadd.f32 %v872_v55, %v766_v61 }
 0x271   :  { %v783_v47 = vsel %vm782_vm4, %v778_v52, -inf  ;;  %v776_v9 = vadd.f32 %v872_v55, %v765_v6 }
 0x272   :  { %v785_v11 = vmax.f32 %v783_v47, %v784_v7  ;;  %v781_v12 = vmax.f32 %v777_v8, 0.0 }
 0x273   :  { %v780_v13 = vmax.f32 %v776_v9, 0.0 }
 0x274   :  { %v786_v14 = vrot.slane %v785_v11, 4  ;;  %v793_v10 = vsel %vm782_vm4, %v781_v12, -inf }
 0x275   :  { %v792_v15 = vsel %vm782_vm4, %v780_v13, -inf }
 0x276   :  { %v787_v16 = vmax.f32 %v785_v11, %v786_v14  ;;  %v794_v17 = vmax.f32 %v792_v15, %v793_v10 }
 0x278   :  { %v795_v5 = vrot.slane %v794_v17, 4  ;;  %v788_v18 = vrot.slane %v787_v16, 2 }
 0x27a   :  { %v796_v19 = vmax.f32 %v794_v17, %v795_v5  ;;  %v789_v20 = vmax.f32 %v787_v16, %v788_v18 }
 0x27c   :  { %v797_v21 = vrot.slane %v796_v19, 2  ;;  %v790_v22 = vrot.slane %v789_v20, 1 }
 0x27e   :  { %v798_v23 = vmax.f32 %v796_v19, %v797_v21  ;;  %v791_v25 = vmax.f32 %v789_v20, %v790_v22 }
 0x280   :  { %v799_v24 = vrot.slane %v798_v23, 1 }
 0x282   :  { %v800_v26 = vmax.f32 %v798_v23, %v799_v24 }
 0x284   :  { %v804_v27 = vsel %vm803_vm5, %v800_v26, %v791_v25 }
 0x285   :  { %807 = vst.msk [vmem:[#allocation2] sm:$0x3] %vm806_vm6, %v804_v27 }
 0x286   :  { %1205 = shalt.err (!%p1202_p4)
}
 0x287   :  { %s1206_s13 = scalar_lea.hbm %s1584_s6, 32 }
 0x288   :  { %p1207_p5 = scmp.ne.s32.totalorder %s1584_s6, %s1206_s13  ;;  %p1210_p6 = scmp.lt.u32.totalorder %s1206_s13, %s1584_s6 }
 0x28a   :  { %p1212_p7 = pnand %p1210_p6, %p1207_p5 }
 0x28c   :  { %1215 = shalt.err (!%p1212_p7)
}
 0x28d   :  { %817 = dma.vmem_to_hbm [thread:$0]  %s815_s10, 32, %s1584_s6, [#allocation3]  }
 0x28e   :  { %1216 = dma.done.wait [#allocation3], 32  }
 0x28f   :  { %1217 = vsyncadd [#allocation3], 4294967264 }
 0x290   :  { %821 = vsyncpa [#allocation3], 1 }

</bundles_post_ra>
